<compile_context>
chip_gen: v6e
topology: v6e:2x2x1
jax: 0.10.0
libtpu: 0.0.40
codegen_flags: <defaults>
</compile_context>

<pallas_src>
import functools

import jax
import jax.numpy as jnp
from jax.experimental import pallas as pl
from jax.experimental.pallas import tpu as pltpu


# --------------------------------------------------------------------------
# Fused kernel: one batch element per grid step.
# --------------------------------------------------------------------------
def _downsample_kernel(xe_ref, xo_ref, w_ref, b_ref, g_ref, beta_ref, o_ref,
                       *, K, T_out, eps):
    # xe_ref  : (1, L, C_in)      even time steps of the causally padded input
    # xo_ref  : (1, L, C_in)      odd  time steps of the causally padded input
    # w_ref   : (K, C_in, C_out)  conv weight, pre-transposed in the wrapper
    # b_ref   : (1, C_out)        conv bias
    # g_ref   : (1, C_out)        LayerNorm gamma
    # beta_ref: (1, C_out)        LayerNorm beta
    # o_ref   : (1, T_out, C_out)
    xe = xe_ref[0].astype(jnp.float32)                      # (L, C_in)
    xo = xo_ref[0].astype(jnp.float32)                      # (L, C_in)
    streams = (xe, xo)
    C_out = w_ref.shape[-1]

    # --- causal conv1d fused with the ::2 downsample -----------------------
    # output row t_out needs padded-input rows 2*t_out + k, k = 0..K-1.
    # k even -> even stream at offset k//2 ; k odd -> odd stream at offset k//2.
    # All offsets are static Python ints -> contiguous static slices only.
    acc = jnp.zeros((T_out, C_out), jnp.float32)
    for k in range(K):                                      # K small & static
        s = streams[k % 2]
        start = k // 2
        acc = acc + jnp.dot(s[start:start + T_out, :],
                            w_ref[k].astype(jnp.float32),
                            preferred_element_type=jnp.float32)
    y = acc + b_ref[...]                                    # (T_out, C_out)

    # --- GELU (tanh approximation, see TODO above) --------------------------
    c = 0.7978845608028654  # sqrt(2/pi)
    y = 0.5 * y * (1.0 + jnp.tanh(c * (y + 0.044715 * y * y * y)))

    # --- LayerNorm over channels -------------------------------------------
    mean = jnp.mean(y, axis=-1, keepdims=True)
    var = jnp.mean((y - mean) ** 2, axis=-1, keepdims=True)
    y = (y - mean) * jax.lax.rsqrt(var + eps)
    y = y * g_ref[...] + beta_ref[...]

    o_ref[...] = y[None].astype(o_ref.dtype)


# --------------------------------------------------------------------------
# Wrapper: one pallas_call for the whole module forward.
# --------------------------------------------------------------------------
def downsample_forward(params, x, *, kernel_size, eps=1e-5):
    """x: (B, T, C_in) -> (B, ceil(T/2), C_out)."""
    B, T, C_in = x.shape
    K = kernel_size
    w = params["conv_w"]                                    # (C_out, C_in, K) PyTorch layout
    C_out = w.shape[0]
    T_out = (T + 1) // 2

    # Pre-transpose once in plain JAX (no in-kernel .T / XLU relayout).
    w_t = jnp.transpose(w, (2, 1, 0))                       # (K, C_in, C_out)

    # Causal left zero-padding in time (pad_mode='constant'), then split the
    # padded sequence into even / odd time streams so the kernel only needs
    # contiguous static slices for the stride-2 conv outputs.
    Tp = T + K - 1
    L = (Tp + 1) // 2                                       # ceil(Tp / 2)
    xp = jnp.pad(x, ((0, 0), (K - 1, 2 * L - Tp), (0, 0)))  # (B, 2L, C_in)
    xr = xp.reshape(B, L, 2, C_in)
    xe = xr[:, :, 0, :]                                     # xp[:, 2t]   (B, L, C_in)
    xo = xr[:, :, 1, :]                                     # xp[:, 2t+1] (B, L, C_in)

    kernel = functools.partial(_downsample_kernel, K=K, T_out=T_out, eps=eps)
    return pl.pallas_call(
        kernel,
        out_shape=jax.ShapeDtypeStruct((B, T_out, C_out), x.dtype),
        grid=(B,),
        in_specs=[
            pl.BlockSpec((1, L, C_in), lambda i: (i, 0, 0)),          # even stream
            pl.BlockSpec((1, L, C_in), lambda i: (i, 0, 0)),          # odd stream
            pl.BlockSpec((K, C_in, C_out), lambda i: (0, 0, 0)),      # conv weight
            pl.BlockSpec((1, C_out), lambda i: (0, 0)),               # conv bias
            pl.BlockSpec((1, C_out), lambda i: (0, 0)),               # LN gamma
            pl.BlockSpec((1, C_out), lambda i: (0, 0)),               # LN beta
        ],
        out_specs=pl.BlockSpec((1, T_out, C_out), lambda i: (i, 0, 0)),
        compiler_params=pltpu.CompilerParams(dimension_semantics=("parallel",)),
    )(xe, xo, w_t,
      params["conv_b"].reshape(1, C_out),
      params["ln_g"].reshape(1, C_out),
      params["ln_b"].reshape(1, C_out))


# --------------------------------------------------------------------------
# Pure-JAX reference (independent conv via lax.conv_general_dilated).
# --------------------------------------------------------------------------
def _downsample_ref(params, x, *, kernel_size, eps=1e-5):
    K = kernel_size
    w = params["conv_w"]                                    # (C_out, C_in, K)
    y = jax.lax.conv_general_dilated(
        x, jnp.transpose(w, (2, 1, 0)),                     # rhs: (K, C_in, C_out)
        window_strides=(1,), padding=[(K - 1, 0)],
        dimension_numbers=("NWC", "WIO", "NWC"))
    y = y + params["conv_b"]
    y = jax.nn.gelu(y, approximate=True)                    # same tanh formula as kernel
    m = jnp.mean(y, -1, keepdims=True)
    v = jnp.mean((y - m) ** 2, -1, keepdims=True)
    y = (y - m) * jax.lax.rsqrt(v + eps) * params["ln_g"] + params["ln_b"]
    return y[:, ::2, :]


# --------------------------------------------------------------------------
# Deterministic parameter init (matches PyTorch Conv1d / LayerNorm defaults).
# --------------------------------------------------------------------------
def init_downsample(key, in_ch, out_ch, kernel_size):
    kw, kb = jax.random.split(key)
    bound = 1.0 / ((in_ch * kernel_size) ** 0.5)
    return {
        "conv_w": jax.random.uniform(kw, (out_ch, in_ch, kernel_size),
                                     jnp.float32, -bound, bound),
        "conv_b": jax.random.uniform(kb, (out_ch,), jnp.float32, -bound, bound),
        "ln_g": jnp.ones((out_ch,), jnp.float32),
        "ln_b": jnp.zeros((out_ch,), jnp.float32),
    }


# --------------------------------------------------------------------------
if __name__ == "__main__":
    B, T = 2, 16
    in_ch, out_ch = 32, 32
    kernel_size = 7

    root = jax.random.PRNGKey(0)
    kx, kp = jax.random.split(root)
    x = jax.random.normal(kx, (B, T, in_ch), jnp.float32)
    params = init_downsample(kp, in_ch, out_ch, kernel_size)

    fwd = jax.jit(functools.partial(downsample_forward, kernel_size=kernel_size))
    y = jax.block_until_ready(fwd(params, x))

    y_ref = _downsample_ref(params, x, kernel_size=kernel_size)
    assert y.shape == (B, (T + 1) // 2, out_ch)
    assert jnp.all(jnp.isfinite(y))
    assert jnp.allclose(y, y_ref, rtol=1e-4, atol=1e-4)

    # Also check an odd sequence length (::2 keeps ceil(T/2) steps).
    x2 = jax.random.normal(jax.random.PRNGKey(1), (B, T + 1, in_ch), jnp.float32)
    y2 = jax.block_until_ready(
        jax.jit(functools.partial(downsample_forward, kernel_size=kernel_size))(params, x2))
    y2_ref = _downsample_ref(params, x2, kernel_size=kernel_size)
    assert y2.shape == (B, (T + 2) // 2, out_ch)
    assert jnp.allclose(y2, y2_ref, rtol=1e-4, atol=1e-4)

    print("KERNEL_OK")
</pallas_src>

<mosaic_0001>
module attributes {stable_mosaic.version = 11 : i64} {
  func.func @_downsample_kernel(%arg0: i32, %arg1: memref<1x11x32xf32, #tpu.memory_space<vmem>>, %arg2: memref<1x11x32xf32, #tpu.memory_space<vmem>>, %arg3: memref<7x32x32xf32, #tpu.memory_space<vmem>>, %arg4: memref<1x32xf32, #tpu.memory_space<vmem>>, %arg5: memref<1x32xf32, #tpu.memory_space<vmem>>, %arg6: memref<1x32xf32, #tpu.memory_space<vmem>>, %arg7: memref<1x8x32xf32, #tpu.memory_space<vmem>>) attributes {dimension_semantics = [#tpu.dimension_semantics<parallel>], iteration_bounds = array<i64: 2>, scalar_prefetch = 0 : i64, scratch_operands = 0 : i64, tpu.core_type = #tpu.core_type<tc>, window_params = [{transform_indices = @transform_0, window_bounds = array<i64: 1, 11, 32>}, {transform_indices = @transform_1, window_bounds = array<i64: 1, 11, 32>}, {pipeline_mode = #tpu.pipeline_mode<synchronous>, transform_indices = @transform_2, window_bounds = array<i64: 7, 32, 32>}, {pipeline_mode = #tpu.pipeline_mode<synchronous>, transform_indices = @transform_3, window_bounds = array<i64: 1, 32>}, {pipeline_mode = #tpu.pipeline_mode<synchronous>, transform_indices = @transform_4, window_bounds = array<i64: 1, 32>}, {pipeline_mode = #tpu.pipeline_mode<synchronous>, transform_indices = @transform_5, window_bounds = array<i64: 1, 32>}, {transform_indices = @transform_6, window_bounds = array<i64: 1, 8, 32>}]} {
    %c0 = arith.constant 0 : index
    %c0_0 = arith.constant 0 : index
    %c0_1 = arith.constant 0 : index
    %0 = vector.load %arg1[%c0, %c0_0, %c0_1] : memref<1x11x32xf32, #tpu.memory_space<vmem>>, vector<1x11x32xf32>
    %1 = vector.shape_cast %0 : vector<1x11x32xf32> to vector<11x32xf32>
    %c0_2 = arith.constant 0 : index
    %c0_3 = arith.constant 0 : index
    %c0_4 = arith.constant 0 : index
    %2 = vector.load %arg2[%c0_2, %c0_3, %c0_4] : memref<1x11x32xf32, #tpu.memory_space<vmem>>, vector<1x11x32xf32>
    %3 = vector.shape_cast %2 : vector<1x11x32xf32> to vector<11x32xf32>
    %cst = arith.constant 0.000000e+00 : f32
    %4 = vector.broadcast %cst : f32 to vector<8x32xf32>
    %5 = vector.extract_strided_slice %1 {offsets = [0, 0], sizes = [8, 32], strides = [1, 1]} : vector<11x32xf32> to vector<8x32xf32>
    %c0_5 = arith.constant 0 : index
    %c0_6 = arith.constant 0 : index
    %c0_7 = arith.constant 0 : index
    %6 = vector.load %arg3[%c0_5, %c0_6, %c0_7] : memref<7x32x32xf32, #tpu.memory_space<vmem>>, vector<1x32x32xf32>
    %7 = vector.shape_cast %6 : vector<1x32x32xf32> to vector<32x32xf32>
    %cst_8 = arith.constant dense<0.000000e+00> : vector<8x32xf32>
    %8 = tpu.matmul %5, %7, %cst_8 {dimension_numbers = #tpu.dot_dimension_numbers<[1], [0], [0], [1], [0, 0, 1, 1], [], []>} : vector<8x32xf32>, vector<32x32xf32>, vector<8x32xf32> -> vector<8x32xf32>
    %9 = arith.addf %4, %8 : vector<8x32xf32>
    %10 = vector.extract_strided_slice %3 {offsets = [0, 0], sizes = [8, 32], strides = [1, 1]} : vector<11x32xf32> to vector<8x32xf32>
    %c1 = arith.constant 1 : index
    %c0_9 = arith.constant 0 : index
    %c0_10 = arith.constant 0 : index
    %11 = vector.load %arg3[%c1, %c0_9, %c0_10] : memref<7x32x32xf32, #tpu.memory_space<vmem>>, vector<1x32x32xf32>
    %12 = vector.shape_cast %11 : vector<1x32x32xf32> to vector<32x32xf32>
    %cst_11 = arith.constant dense<0.000000e+00> : vector<8x32xf32>
    %13 = tpu.matmul %10, %12, %cst_11 {dimension_numbers = #tpu.dot_dimension_numbers<[1], [0], [0], [1], [0, 0, 1, 1], [], []>} : vector<8x32xf32>, vector<32x32xf32>, vector<8x32xf32> -> vector<8x32xf32>
    %14 = arith.addf %9, %13 : vector<8x32xf32>
    %15 = vector.extract_strided_slice %1 {offsets = [1, 0], sizes = [8, 32], strides = [1, 1]} : vector<11x32xf32> to vector<8x32xf32>
    %c2 = arith.constant 2 : index
    %c0_12 = arith.constant 0 : index
    %c0_13 = arith.constant 0 : index
    %16 = vector.load %arg3[%c2, %c0_12, %c0_13] : memref<7x32x32xf32, #tpu.memory_space<vmem>>, vector<1x32x32xf32>
    %17 = vector.shape_cast %16 : vector<1x32x32xf32> to vector<32x32xf32>
    %cst_14 = arith.constant dense<0.000000e+00> : vector<8x32xf32>
    %18 = tpu.matmul %15, %17, %cst_14 {dimension_numbers = #tpu.dot_dimension_numbers<[1], [0], [0], [1], [0, 0, 1, 1], [], []>} : vector<8x32xf32>, vector<32x32xf32>, vector<8x32xf32> -> vector<8x32xf32>
    %19 = arith.addf %14, %18 : vector<8x32xf32>
    %20 = vector.extract_strided_slice %3 {offsets = [1, 0], sizes = [8, 32], strides = [1, 1]} : vector<11x32xf32> to vector<8x32xf32>
    %c3 = arith.constant 3 : index
    %c0_15 = arith.constant 0 : index
    %c0_16 = arith.constant 0 : index
    %21 = vector.load %arg3[%c3, %c0_15, %c0_16] : memref<7x32x32xf32, #tpu.memory_space<vmem>>, vector<1x32x32xf32>
    %22 = vector.shape_cast %21 : vector<1x32x32xf32> to vector<32x32xf32>
    %cst_17 = arith.constant dense<0.000000e+00> : vector<8x32xf32>
    %23 = tpu.matmul %20, %22, %cst_17 {dimension_numbers = #tpu.dot_dimension_numbers<[1], [0], [0], [1], [0, 0, 1, 1], [], []>} : vector<8x32xf32>, vector<32x32xf32>, vector<8x32xf32> -> vector<8x32xf32>
    %24 = arith.addf %19, %23 : vector<8x32xf32>
    %25 = vector.extract_strided_slice %1 {offsets = [2, 0], sizes = [8, 32], strides = [1, 1]} : vector<11x32xf32> to vector<8x32xf32>
    %c4 = arith.constant 4 : index
    %c0_18 = arith.constant 0 : index
    %c0_19 = arith.constant 0 : index
    %26 = vector.load %arg3[%c4, %c0_18, %c0_19] : memref<7x32x32xf32, #tpu.memory_space<vmem>>, vector<1x32x32xf32>
    %27 = vector.shape_cast %26 : vector<1x32x32xf32> to vector<32x32xf32>
    %cst_20 = arith.constant dense<0.000000e+00> : vector<8x32xf32>
    %28 = tpu.matmul %25, %27, %cst_20 {dimension_numbers = #tpu.dot_dimension_numbers<[1], [0], [0], [1], [0, 0, 1, 1], [], []>} : vector<8x32xf32>, vector<32x32xf32>, vector<8x32xf32> -> vector<8x32xf32>
    %29 = arith.addf %24, %28 : vector<8x32xf32>
    %30 = vector.extract_strided_slice %3 {offsets = [2, 0], sizes = [8, 32], strides = [1, 1]} : vector<11x32xf32> to vector<8x32xf32>
    %c5 = arith.constant 5 : index
    %c0_21 = arith.constant 0 : index
    %c0_22 = arith.constant 0 : index
    %31 = vector.load %arg3[%c5, %c0_21, %c0_22] : memref<7x32x32xf32, #tpu.memory_space<vmem>>, vector<1x32x32xf32>
    %32 = vector.shape_cast %31 : vector<1x32x32xf32> to vector<32x32xf32>
    %cst_23 = arith.constant dense<0.000000e+00> : vector<8x32xf32>
    %33 = tpu.matmul %30, %32, %cst_23 {dimension_numbers = #tpu.dot_dimension_numbers<[1], [0], [0], [1], [0, 0, 1, 1], [], []>} : vector<8x32xf32>, vector<32x32xf32>, vector<8x32xf32> -> vector<8x32xf32>
    %34 = arith.addf %29, %33 : vector<8x32xf32>
    %35 = vector.extract_strided_slice %1 {offsets = [3, 0], sizes = [8, 32], strides = [1, 1]} : vector<11x32xf32> to vector<8x32xf32>
    %c6 = arith.constant 6 : index
    %c0_24 = arith.constant 0 : index
    %c0_25 = arith.constant 0 : index
    %36 = vector.load %arg3[%c6, %c0_24, %c0_25] : memref<7x32x32xf32, #tpu.memory_space<vmem>>, vector<1x32x32xf32>
    %37 = vector.shape_cast %36 : vector<1x32x32xf32> to vector<32x32xf32>
    %cst_26 = arith.constant dense<0.000000e+00> : vector<8x32xf32>
    %38 = tpu.matmul %35, %37, %cst_26 {dimension_numbers = #tpu.dot_dimension_numbers<[1], [0], [0], [1], [0, 0, 1, 1], [], []>} : vector<8x32xf32>, vector<32x32xf32>, vector<8x32xf32> -> vector<8x32xf32>
    %39 = arith.addf %34, %38 : vector<8x32xf32>
    %c0_27 = arith.constant 0 : index
    %c0_28 = arith.constant 0 : index
    %40 = vector.load %arg4[%c0_27, %c0_28] : memref<1x32xf32, #tpu.memory_space<vmem>>, vector<1x32xf32>
    %41 = vector.broadcast %40 : vector<1x32xf32> to vector<8x32xf32>
    %42 = arith.addf %39, %41 : vector<8x32xf32>
    %cst_29 = arith.constant 5.000000e-01 : f32
    %43 = vector.broadcast %cst_29 : f32 to vector<8x32xf32>
    %44 = arith.mulf %43, %42 : vector<8x32xf32>
    %cst_30 = arith.constant 4.471500e-02 : f32
    %45 = vector.broadcast %cst_30 : f32 to vector<8x32xf32>
    %46 = arith.mulf %45, %42 : vector<8x32xf32>
    %47 = arith.mulf %46, %42 : vector<8x32xf32>
    %48 = arith.mulf %47, %42 : vector<8x32xf32>
    %49 = arith.addf %42, %48 : vector<8x32xf32>
    %cst_31 = arith.constant 0.797884583 : f32
    %50 = vector.broadcast %cst_31 : f32 to vector<8x32xf32>
    %51 = arith.mulf %50, %49 : vector<8x32xf32>
    %52 = math.tanh %51 : vector<8x32xf32>
    %cst_32 = arith.constant 1.000000e+00 : f32
    %53 = vector.broadcast %cst_32 : f32 to vector<8x32xf32>
    %54 = arith.addf %53, %52 : vector<8x32xf32>
    %55 = arith.mulf %44, %54 : vector<8x32xf32>
    %cst_33 = arith.constant dense<0.000000e+00> : vector<8xf32>
    %56 = vector.multi_reduction <add>, %55, %cst_33 [1] : vector<8x32xf32> to vector<8xf32>
    %57 = vector.shape_cast %56 : vector<8xf32> to vector<8x1xf32>
    %cst_34 = arith.constant 3.200000e+01 : f32
    %58 = vector.broadcast %cst_34 : f32 to vector<8x1xf32>
    %59 = arith.divf %57, %58 : vector<8x1xf32>
    %60 = vector.broadcast %59 : vector<8x1xf32> to vector<8x32xf32>
    %61 = arith.subf %55, %60 : vector<8x32xf32>
    %62 = arith.mulf %61, %61 : vector<8x32xf32>
    %cst_35 = arith.constant dense<0.000000e+00> : vector<8xf32>
    %63 = vector.multi_reduction <add>, %62, %cst_35 [1] : vector<8x32xf32> to vector<8xf32>
    %64 = vector.shape_cast %63 : vector<8xf32> to vector<8x1xf32>
    %cst_36 = arith.constant 3.200000e+01 : f32
    %65 = vector.broadcast %cst_36 : f32 to vector<8x1xf32>
    %66 = arith.divf %64, %65 : vector<8x1xf32>
    %67 = vector.broadcast %59 : vector<8x1xf32> to vector<8x32xf32>
    %68 = arith.subf %55, %67 : vector<8x32xf32>
    %cst_37 = arith.constant 9.99999974E-6 : f32
    %69 = vector.broadcast %cst_37 : f32 to vector<8x1xf32>
    %70 = arith.addf %66, %69 : vector<8x1xf32>
    %71 = math.rsqrt %70 : vector<8x1xf32>
    %72 = vector.broadcast %71 : vector<8x1xf32> to vector<8x32xf32>
    %73 = arith.mulf %68, %72 : vector<8x32xf32>
    %c0_38 = arith.constant 0 : index
    %c0_39 = arith.constant 0 : index
    %74 = vector.load %arg5[%c0_38, %c0_39] : memref<1x32xf32, #tpu.memory_space<vmem>>, vector<1x32xf32>
    %75 = vector.broadcast %74 : vector<1x32xf32> to vector<8x32xf32>
    %76 = arith.mulf %73, %75 : vector<8x32xf32>
    %c0_40 = arith.constant 0 : index
    %c0_41 = arith.constant 0 : index
    %77 = vector.load %arg6[%c0_40, %c0_41] : memref<1x32xf32, #tpu.memory_space<vmem>>, vector<1x32xf32>
    %78 = vector.broadcast %77 : vector<1x32xf32> to vector<8x32xf32>
    %79 = arith.addf %76, %78 : vector<8x32xf32>
    %80 = vector.shape_cast %79 : vector<8x32xf32> to vector<1x8x32xf32>
    %c0_42 = arith.constant 0 : index
    %c0_43 = arith.constant 0 : index
    %c0_44 = arith.constant 0 : index
    %81 = vector.load %arg7[%c0_42, %c0_43, %c0_44] : memref<1x8x32xf32, #tpu.memory_space<vmem>>, vector<1x8x32xf32>
    tpu.vector_store %arg7[%c0_42, %c0_43, %c0_44], %80 {strides = array<i32>} : memref<1x8x32xf32, #tpu.memory_space<vmem>>, vector<1x8x32xf32>,
    return
  }
  func.func @transform_0(%arg0: i32) -> (i32, i32, i32) {
    %c0_i32 = arith.constant 0 : i32
    %c0_i32_0 = arith.constant 0 : i32
    %c0_i32_1 = arith.constant 0 : i32
    return %arg0, %c0_i32, %c0_i32_0 : i32, i32, i32
  }
  func.func @transform_1(%arg0: i32) -> (i32, i32, i32) {
    %c0_i32 = arith.constant 0 : i32
    %c0_i32_0 = arith.constant 0 : i32
    %c0_i32_1 = arith.constant 0 : i32
    return %arg0, %c0_i32, %c0_i32_0 : i32, i32, i32
  }
  func.func @transform_2(%arg0: i32) -> (i32, i32, i32) {
    %c0_i32 = arith.constant 0 : i32
    %c0_i32_0 = arith.constant 0 : i32
    %c0_i32_1 = arith.constant 0 : i32
    %c0_i32_2 = arith.constant 0 : i32
    return %c0_i32, %c0_i32_0, %c0_i32_1 : i32, i32, i32
  }
  func.func @transform_3(%arg0: i32) -> (i32, i32) {
    %c0_i32 = arith.constant 0 : i32
    %c0_i32_0 = arith.constant 0 : i32
    %c0_i32_1 = arith.constant 0 : i32
    return %c0_i32, %c0_i32_0 : i32, i32
  }
  func.func @transform_4(%arg0: i32) -> (i32, i32) {
    %c0_i32 = arith.constant 0 : i32
    %c0_i32_0 = arith.constant 0 : i32
    %c0_i32_1 = arith.constant 0 : i32
    return %c0_i32, %c0_i32_0 : i32, i32
  }
  func.func @transform_5(%arg0: i32) -> (i32, i32) {
    %c0_i32 = arith.constant 0 : i32
    %c0_i32_0 = arith.constant 0 : i32
    %c0_i32_1 = arith.constant 0 : i32
    return %c0_i32, %c0_i32_0 : i32, i32
  }
  func.func @transform_6(%arg0: i32) -> (i32, i32, i32) {
    %c0_i32 = arith.constant 0 : i32
    %c0_i32_0 = arith.constant 0 : i32
    %c0_i32_1 = arith.constant 0 : i32
    return %arg0, %c0_i32, %c0_i32_0 : i32, i32, i32
  }
}

</mosaic_0001>

<bundles_post_ra>
// kernel: downsample_forward.1
= control target key start
LH: loop header
LB: loop body
LE: loop exit
PB: predicated region body
PF: predicated region fallthrough
CT: control target
= control target key end

     0   :  { %11 = vsyncpa [#allocation3], 0  ;;  %s1538_s0 = inlined_call_operand.vmem [shape: f32[2,11,32], index: 0, kind: input, shape index: {}]   ;;  %s1539_s1 = inlined_call_operand.vmem [shape: f32[2,11,32], index: 1, kind: input, shape index: {}]   ;;  %s1540_s2 = inlined_call_operand.vmem [shape: f32[7,32,32], index: 2, kind: input, shape index: {}]   ;;  %s1541_s3 = inlined_call_operand.vmem [shape: f32[1,32], index: 3, kind: input, shape index: {}]   ;;  %s1542_s4 = inlined_call_operand.vmem [shape: f32[1,32], index: 4, kind: input, shape index: {}]   ;;  %s1543_s5 = inlined_call_operand.vmem [shape: f32[1,32], index: 5, kind: input, shape index: {}]   ;;  %s1544_s6 = inlined_call_operand.hbm [shape: f32[2,8,32], index: 6, kind: output, shape index: {}]  }
   0x1   :  { %13 = vsyncpa [#allocation3 + $0x1], 0  ;;  %s1279_s21 = smov 0   ;;  %s1281_s22 = smov 0  }
   0x2   :  { %s1283_s23 = smov 0   ;;  %s1285_s24 = smov 0  }
   0x3 LB: > { %s1300_s25 = sadd.s32 4294967295, %s1239_s24   ;;  %s973_s26 = sadd.s32 4294967294, %s1239_s24   ;;  %s1239_s24 = sphi %s1285_s24, %s1550_s24   ;;  %s1235_s23 = sphi %s1283_s23, %s1549_s23   ;;  %s1231_s22 = sphi %s1281_s22, %s1548_s22   ;;  %s1227_s21 = sphi %s1279_s21, %s1547_s21  }
   0x4   : > { %s1304_s27 = sadd.s32 1, %s1239_s24   ;;  %s162_s28 = sadd.s32 1, %s1235_s23 }
   0x5   : > { %s159_s29 = ssub.s32 %s1239_s24, %s1304_s27  ;;  %p172_p0 = scmp.ne.s32.totalorder %s1235_s23, %s1231_s22 }
   0x6   : > { %p160_p1 = scmp.eq.s32.totalorder %s159_s29, 0  ;;  %p173_p2 = scmp.eq.s32.totalorder %s1300_s25, 1 }
   0x7   : > { %p178_p3 = scmp.ne.s32.totalorder %s1231_s22, %s1227_s21  ;;  %p179_p4 = scmp.eq.s32.totalorder %s973_s26, 1 }
   0x8   : > { %s1315_s30 = scalar_select %p160_p1, %s1235_s23, %s162_s28  }
   0x9   : > { %p1317_p5 = por %p173_p2, %p172_p0  ;;  %p1321_p6 = por %p179_p4, %p178_p3 }
   0xa   : > { %p976_p7 = scmp.ge.s32.totalorder %s1239_s24, 1  ;;  %p225_p8 = scmp.lt.s32.totalorder %s1239_s24, 3 }
   0xc   : > { %p226_p9 = pnand %p976_p7, %p225_p8 }
   0xd   : > { %p260_p10 = scmp.lt.s32.totalorder (!%p226_p9), %s1300_s25, 1  ;;  %s1017_s26 = sshll.u32 (!%p226_p9), %s1300_s25, 7 }
   0xe   : > { %229 = sbr.rel (%p226_p9) target bundleno = 603 (0x25b), region = 44  ;;  %s900_s11 = scalar_lea.hbm (!%p226_p9), %s1544_s6, %s1017_s26 }
   0xf   : > { %s1243_s14 = smov (!%p226_p9), [#allocation2]  }
  0x13   : > { %v985_v0 = vld [vmem:[%s1540_s2 + $0x38] sm:$0xff]  ;;  %v1241_v2 = vmov 0.0   ;;  %v984_v3 = vld [vmem:[%s1540_s2 + $0x30] sm:$0xff]  ;;  %s261_s17 = scalar_select %p260_p10, %s1300_s25, 1  ;;  %v983_v5 = vld [vmem:[%s1540_s2 + $0x28] sm:$0xff]  ;;  %vm283_vm0 = vcmask 261120  }
  0x14   : > { %v277_v1 = vld [vmem:[%s1540_s2 + $0x18] sm:$0xff]  ;;  %1057 = vmatprep.subr.mxu0 %v1241_v2  ;;  %1068 = vmatprep.subr.mxu1 %v1241_v2  ;;  %v276_v4 = vld [vmem:[%s1540_s2 + $0x10] sm:$0xff]  ;;  %v275_v6 = vld [vmem:[%s1540_s2 + $0x8] sm:$0xff]  ;;  %vm1242_vm1 = vmmov 0   ;;  %vm436_vm2 = vcmask 1046528   ;;  %vm600_vm3 = vcmask 1045504  }
  0x15   : > { %1058 = vmatpush3.msra.mxu0 %v985_v0  ;;  %1069 = vmatpush3.msra.mxu1 %v277_v1  ;;  %s1020_s28 = sshll.u32 %s261_s17, 4  ;;  %v982_v7 = vld [vmem:[%s1540_s2 + $0x20] sm:$0xff]  ;;  %v991_v12 = vld [vmem:[%s1540_s2 + $0x58] sm:$0xff]  ;;  %v990_v13 = vld [vmem:[%s1540_s2 + $0x50] sm:$0xff]  ;;  %vm763_vm4 = vcmask 1044480   ;;  %s1183_s17 = sshll.u32 %s1243_s14, 4  ;;  %s1184_s17 = int_to_ptr.vmem [resolvable:$false] %s1183_s17 }
  0x16   : > { %1059 = vmatprep.subr.mxu0 %v1241_v2  ;;  %1070 = vmatprep.subr.mxu1 %v1241_v2  ;;  %s269_s12 = scalar_lea.vmem %s1539_s1, %s1020_s28  ;;  %s264_s15 = scalar_lea.vmem %s1538_s0, %s1020_s28  ;;  %v274_v9 = vld [vmem:[%s1540_s2] sm:$0xff]  ;;  %v996_v14 = vld [vmem:[%s1540_s2 + $0x78] sm:$0xff]  ;;  %v989_v18 = vld [vmem:[%s1540_s2 + $0x48] sm:$0xff] }
  0x17   : > { %1060 = vmatpush3.msra.mxu0 %v984_v3  ;;  %1071 = vmatpush3.msra.mxu1 %v276_v4  ;;  %v1362_v8 = vld [vmem:[%s269_s12] sm:$0xff]  ;;  %v1373_v11 = vld [vmem:[%s264_s15 + $0x8] sm:$0x7]  ;;  %v995_v19 = vld [vmem:[%s1540_s2 + $0x70] sm:$0xff]  ;;  %s1185_s25 = scalar_lea.vmem %s1184_s17, 256 }
  0x18   : > { %1061 = vmatprep.subr.mxu0 %v1241_v2  ;;  %1072 = vmatprep.subr.mxu1 %v1241_v2  ;;  %v1371_v10 = vld [vmem:[%s264_s15] sm:$0xff]  ;;  %v1389_v15 = vld [vmem:[%s269_s12 + $0x8] sm:$0x7]  ;;  %v438_v17 = vrot.slane %v1373_v11, 1  ;;  %v519_v20 = vrot.slane %v1362_v8, 1  ;;  %v1001_v26 = vld [vmem:[%s1540_s2 + $0x98] sm:$0xff] }
  0x19   : > { %1062 = vmatpush3.msra.mxu0 %v983_v5  ;;  %1073 = vmatpush3.msra.mxu1 %v275_v6  ;;  %v437_v16 = vrot.slane %v1371_v10, 1  ;;  %v520_v21 = vrot.slane %v1389_v15, 1  ;;  %v988_v22 = vld [vmem:[%s1540_s2 + $0x40] sm:$0xff]  ;;  %v994_v23 = vld [vmem:[%s1540_s2 + $0x68] sm:$0xff]  ;;  %v1000_v28 = vld [vmem:[%s1540_s2 + $0x90] sm:$0xff]  ;;  %v601_v30 = vrot.slane %v1371_v10, 2 }
  0x1a   : > { %1063 = vmatprep.subr.mxu0 %v1241_v2  ;;  %1065 = vmatprep.mubr.msk.f32.mxu0 %vm1242_vm1, %v1241_v2  ;;  %v993_v25 = vld [vmem:[%s1540_s2 + $0x60] sm:$0xff]  ;;  %v1006_v29 = vld [vmem:[%s1540_s2 + $0xb8] sm:$0xff]  ;;  %v602_v31 = vrot.slane %v1373_v11, 2  ;;  %v999_v32 = vld [vmem:[%s1540_s2 + $0x88] sm:$0xff]  ;;  %v682_v34 = vrot.slane %v1362_v8, 2  ;;  %v683_v35 = vrot.slane %v1389_v15, 2 }
  0x1b   : > { %1064 = vmatpush3.msra.mxu0 %v982_v7  ;;  %1074 = vmatprep.subr.mxu1 %v1241_v2  ;;  %v439_v24 = vsel %vm436_vm2, %v437_v16, %v438_v17  ;;  %v521_v27 = vsel %vm436_vm2, %v519_v20, %v520_v21  ;;  %v1005_v33 = vld [vmem:[%s1540_s2 + $0xb0] sm:$0xff]  ;;  %v998_v36 = vld [vmem:[%s1540_s2 + $0x80] sm:$0xff]  ;;  %v1004_v37 = vld [vmem:[%s1540_s2 + $0xa8] sm:$0xff]  ;;  %v764_v43 = vrot.slane %v1371_v10, 3  ;;  %v765_v44 = vrot.slane %v1373_v11, 3  ;;  %s257_s15 = sand.u32 1, %s1231_s22  }
  0x1c   : > { %1066 = vmatmul.mubr.msk.f32.vlgmr.msra.gmra.mxu0 %vm283_vm0, %v1362_v8  ;;  %1075 = vmatpush3.msra.mxu1 %v274_v9  ;;  %v603_v38 = vsel %vm600_vm3, %v601_v30, %v602_v31  ;;  %v1003_v39 = vld [vmem:[%s1540_s2 + $0xa0] sm:$0xff]  ;;  %v1011_v40 = vld [vmem:[%s1540_s2 + $0xd8] sm:$0xff]  ;;  %v684_v41 = vsel %vm600_vm3, %v682_v34, %v683_v35  ;;  %v1010_v42 = vld [vmem:[%s1540_s2 + $0xd0] sm:$0xff]  ;;  %s977_s16 = sshll.u32 %s257_s15, 3  ;;  %s889_s13 = scalar_lea.sflag [#allocation3], %s257_s15 }
  0x1d   : > { %1076 = vmatprep.mubr.msk.f32.mxu1 %vm1242_vm1, %v1241_v2  ;;  %1079 = vmatprep.subr.mxu0 %v1241_v2  ;;  %v1009_v45 = vld [vmem:[%s1540_s2 + $0xc8] sm:$0xff]  ;;  %v1008_v46 = vld [vmem:[%s1540_s2 + $0xc0] sm:$0xff]  ;;  %v766_v47 = vsel %vm763_vm4, %v764_v43, %v765_v44  ;;  %s259_s28 = scalar_lea.vmem [#allocation2], %s977_s16 }
  0x1e   : > { %1077 = vmatmul.mubr.msk.f32.vlgmr.msra.gmra.mxu1 %vm283_vm0, %v1371_v10  ;;  %1080 = vmatpush3.msra.mxu0 %v991_v12  ;;  %s902_s29 = sshll.u32 %s259_s28, 4  ;;  %s903_s29 = int_to_ptr.vmem [resolvable:$true] %s902_s29 }
  0x1f   : > { %1081 = vmatprep.subr.mxu0 %v1241_v2  ;;  %1090 = vmatprep.subr.mxu1 %v1241_v2  ;;  %s1179_s12 = scalar_lea.vmem %s903_s29, 128  ;;  %p1186_p0 = scmp.lt.s32.totalorder %s903_s29, %s1184_s17 }
  0x20   : > { %1082 = vmatpush3.msra.mxu0 %v990_v13  ;;  %1091 = vmatpush3.msra.mxu1 %v996_v14  ;;  %p1180_p11 = scmp.ne.s32.totalorder %s903_s29, %s1179_s12  ;;  %p1187_p1 = scmp.lt.s32.totalorder %s1185_s25, %s1179_s12 }
  0x21   : > { %1083 = vmatprep.subr.mxu0 %v1241_v2  ;;  %1092 = vmatprep.subr.mxu1 %v1241_v2 }
  0x22   : > { %1084 = vmatpush3.msra.mxu0 %v989_v18  ;;  %1093 = vmatpush3.msra.mxu1 %v995_v19  ;;  %p1181_p12 = pnand %p1180_p11, %p1317_p5  ;;  %p1188_p2 = por %p1187_p1, %p1186_p0 }
  0x23   : > { %1085 = vmatprep.subr.mxu0 %v1241_v2  ;;  %1094 = vmatprep.subr.mxu1 %v1241_v2 }
  0x24   : > { %1086 = vmatpush3.msra.mxu0 %v988_v22  ;;  %1087 = vmatprep.mubr.msk.f32.mxu0 %vm1242_vm1, %v1241_v2  ;;  %p1182_p13 = pneg %p1181_p12 }
  0x25   : > { %1095 = vmatpush3.msra.mxu1 %v994_v23  ;;  %1088 = vmatmul.mubr.msk.f32.vlgmr.msra.gmra.mxu0 %vm283_vm0, %v439_v24 }
  0x26   : > { %1096 = vmatprep.subr.mxu1 %v1241_v2  ;;  %1101 = vmatprep.subr.mxu0 %v1241_v2  ;;  %p1189_p3 = pnand %p1188_p2, %p1182_p13 }
  0x27   : > { %1097 = vmatpush3.msra.mxu1 %v993_v25  ;;  %1098 = vmatprep.mubr.msk.f32.mxu1 %vm1242_vm1, %v1241_v2  ;;  %v1014_v25 = vld [vmem:[%s1542_s4] ss:$0 sm:$0xff] }
  0x28   : > { %1102 = vmatpush3.msra.mxu0 %v1001_v26  ;;  %1099 = vmatmul.mubr.msk.f32.vlgmr.msra.gmra.mxu1 %vm283_vm0, %v521_v27  ;;  %v1015_v27 = vld [vmem:[%s1543_s5] ss:$0 sm:$0xff] }
  0x29   : > { %1103 = vmatprep.subr.mxu0 %v1241_v2  ;;  %1112 = vmatprep.subr.mxu1 %v1241_v2 }
  0x2a   : > { %1104 = vmatpush3.msra.mxu0 %v1000_v28  ;;  %1113 = vmatpush3.msra.mxu1 %v1006_v29 }
  0x2b   : > { %1105 = vmatprep.subr.mxu0 %v1241_v2  ;;  %1114 = vmatprep.subr.mxu1 %v1241_v2 }
  0x2c   : > { %1106 = vmatpush3.msra.mxu0 %v999_v32  ;;  %1115 = vmatpush3.msra.mxu1 %v1005_v33 }
  0x2d   : > { %1107 = vmatprep.subr.mxu0 %v1241_v2  ;;  %1116 = vmatprep.subr.mxu1 %v1241_v2 }
  0x2e   : > { %1108 = vmatpush3.msra.mxu0 %v998_v36  ;;  %1109 = vmatprep.mubr.msk.f32.mxu0 %vm1242_vm1, %v1241_v2 }
  0x2f   : > { %1117 = vmatpush3.msra.mxu1 %v1004_v37  ;;  %1110 = vmatmul.mubr.msk.f32.vlgmr.msra.gmra.mxu0 %vm283_vm0, %v603_v38 }
  0x30   : > { %1118 = vmatprep.subr.mxu1 %v1241_v2  ;;  %1123 = vmatprep.subr.mxu0 %v1241_v2 }
  0x31   : > { %1119 = vmatpush3.msra.mxu1 %v1003_v39  ;;  %1120 = vmatprep.mubr.msk.f32.mxu1 %vm1242_vm1, %v1241_v2 }
  0x32   : > { %1124 = vmatpush3.msra.mxu0 %v1011_v40  ;;  %1121 = vmatmul.mubr.msk.f32.vlgmr.msra.gmra.mxu1 %vm283_vm0, %v684_v41 }
  0x33   : > { %1125 = vmatprep.subr.mxu0 %v1241_v2  ;;  %1131 = vmatprep.mubr.msk.f32.mxu0 %vm1242_vm1, %v1241_v2 }
  0x34   : > { %1126 = vmatpush3.msra.mxu0 %v1010_v42 }
  0x35   : > { %1127 = vmatprep.subr.mxu0 %v1241_v2 }
  0x36   : > { %1128 = vmatpush3.msra.mxu0 %v1009_v45 }
  0x37   : > { %1129 = vmatprep.subr.mxu0 %v1241_v2  ;;  %v1013_v2 = vld [vmem:[%s1541_s3] ss:$0 sm:$0xff] }
  0x38   : > { %1130 = vmatpush3.msra.mxu0 %v1008_v46 }
  0x39   : > { %1132 = vmatmul.mubr.msk.f32.vlgmr.msra.gmra.mxu0 %vm283_vm0, %v766_v47 }
  0xdc   : > { %v353_v48 = vpop.f32.mrf.mxu0 }
  0xde   : > { %v426_v49 = vpop.f32.mrf.mxu1  ;;  %v1067_v50 = vpop.f32.mrf.mxu0 }
  0xdf   : > { %v427_v56 = vadd.f32 %v426_v49, %v353_v48 }
  0xe0   : > { %v1078_v51 = vpop.f32.mrf.mxu1 }
  0xe5   : > { %v508_v52 = vpop.f32.mrf.mxu0 }
  0xe6   : > { %v512_v57 = vadd.f32 %v508_v52, %v427_v56 }
  0xe7   : > { %v1089_v53 = vpop.f32.mrf.mxu0 }
  0xe8   : > { %v590_v54 = vpop.f32.mrf.mxu1 }
  0xe9   : > { %v594_v60 = vadd.f32 %v590_v54, %v512_v57 }
  0xea   : > { %v1100_v55 = vpop.f32.mrf.mxu1 }
  0xef   : > { %v672_v58 = vpop.f32.mrf.mxu0 }
  0xf0   : > { %v676_v62 = vadd.f32 %v672_v58, %v594_v60 }
  0xf1   : > { %v1111_v59 = vpop.f32.mrf.mxu0 }
  0xf2   : > { %v753_v61 = vpop.f32.mrf.mxu1 }
  0xf3   : > { %v757_v0 = vadd.f32 %v753_v61, %v676_v62 }
  0xf4   : > { %v1122_v63 = vpop.f32.mrf.mxu1 }
  0xf9   : > { %v835_v1 = vpop.f32.mrf.mxu0 }
  0xfa   : > { %v839_v3 = vadd.f32 %v835_v1, %v757_v0 }
  0xfb   : > { %v1133_v4 = vpop.f32.mrf.mxu0 }
  0xfc   : > { %v847_v5 = vadd.f32 %v1013_v2, %v839_v3 }
  0xfe   : > { %v849_v6 = vmul.f32 0.044715, %v847_v5  ;;  %v848_v12 = vmul.f32 0.5, %v847_v5 }
 0x100   : > { %v850_v7 = vmul.f32 %v849_v6, %v847_v5 }
 0x102   : > { %v851_v8 = vmul.f32 %v850_v7, %v847_v5 }
 0x104   : > { %v852_v9 = vadd.f32 %v851_v8, %v847_v5 }
 0x106   : > { %v853_v10 = vmul.f32 0.7978846, %v852_v9 }
 0x108   : > { %1175 = vtanh.f32 %v853_v10 }
 0x115   : > { %v1176_v11 = vpop.eup %1175 }
 0x116   : > { %v855_v13 = vadd.f32 1.0, %v1176_v11 }
 0x118   : > { %v856_v14 = vmul.f32 %v855_v13, %v848_v12 }
 0x11a   : > { %v857_v15 = vsel %vm283_vm0, %v856_v14, 0.0 }
 0x11b   : > { %858 = vadd.xlane.f32.xlu0 %v857_v15 }
 0x1a4   : > { %v859_v16 = vpop.xlane.xlu0 %858 }
 0x1a5   : > { %v861_v17 = vmul.f32 0.03125, %v859_v16 }
 0x1a7   : > { %v862_v18 = vsub.f32 %v856_v14, %v861_v17 }
 0x1a9   : > { %v863_v19 = vmul.f32 %v862_v18, %v862_v18 }
 0x1ab   : > { %v864_v20 = vsel %vm283_vm0, %v863_v19, 0.0 }
 0x1ac   : > { %865 = vadd.xlane.f32.xlu0 %v864_v20 }
 0x235   : > { %v866_v21 = vpop.xlane.xlu0 %865 }
 0x236   : > { %v867_v22 = vmul.f32 0.03125, %v866_v21 }
 0x238   : > { %v868_v23 = vadd.f32 1e-05, %v867_v22 }
 0x23a   : > { %1177 = vrsqrt.f32 %v868_v23 }
 0x247   : > { %v1178_v24 = vpop.eup %1177 }
 0x248   : > { %v870_v26 = vmul.f32 %v1178_v24, %v862_v18 }
 0x24a   : > { %v878_v28 = vmul.f32 %v1014_v25, %v870_v26 }
 0x24c   : > { %v886_v29 = vadd.f32 %v1015_v27, %v878_v28 }
 0x24e   : > { %887 = vst.msk [vmem:[%s259_s28] sm:$0xff] %vm283_vm0, %v886_v29 }
 0x24f   : > { %1192 = shalt.err (!%p1189_p3)
}
 0x250   : > { %s1193_s16 = scalar_lea.hbm %s900_s11, 128  ;;  %s1197_s19 = scalar_lea.hbm %s1544_s6, 256 }
 0x251   : > { %p1194_p4 = scmp.ne.s32.totalorder %s900_s11, %s1193_s16  ;;  %p1198_p9 = scmp.lt.s32.totalorder %s900_s11, %s1544_s6 }
 0x252   : > { %p1199_p10 = scmp.lt.s32.totalorder %s1197_s19, %s1193_s16 }
 0x253   : > { %p1195_p7 = pnand %p1194_p4, %p1317_p5 }
 0x254   : > { %p1200_p11 = por %p1199_p10, %p1198_p9 }
 0x255   : > { %p1196_p8 = pneg %p1195_p7 }
 0x257   : > { %p1201_p12 = pnand %p1200_p11, %p1196_p8 }
 0x259   : > { %1204 = shalt.err (!%p1201_p12)
}
 0x25a   : > { %1134 = dma.vmem_to_hbm [thread:$0]  (%p1317_p5), %s903_s29, 128, %s900_s11, %s889_s13  }
 0x25b PF: > { %p1140_p13 = scmp.ge.s32.totalorder %s1239_s24, 2  ;;  %s914_s28 = sand.u32 1, %s1227_s21  }
 0x25c   : > { %s915_s9 = scalar_lea.sflag [#allocation3], %s914_s28 }
 0x25d   : > { %p1137_p0 = pnand %p1140_p13, %p1321_p6 }
 0x25f   : > { %p1138_p1 = pneg %p1137_p0 }
 0x261   : > { %1222 = dma.done.wait (%p1138_p1), %s915_s9, 128  }
 0x262   : > { %1224 = vsyncadd (%p1138_p1), %s915_s9, 4294967168  ;;  %p16_p2 = scmp.ge.s32.totalorder %s1304_s27, 4   ;;  %s1547_s21 = smov %s1231_s22 }
 0x263   : > { %s1548_s22 = smov %s1235_s23  ;;  %s1549_s23 = smov %s1315_s30 }
 0x264   : > { %s1550_s24 = smov %s1304_s27  ;;  %18 = sbr.rel (!%p16_p2) target bundleno = 3 (0x3), region = 88 }
 0x269   :  { %920 = vsyncpa [#allocation3], 1 }
 0x26a   :  { %922 = vsyncpa [#allocation3 + $0x1], 1 }

</bundles_post_ra>
